<compile_context>
chip_gen: v7x
topology: tpu7x:2x2x1
jax: 0.10.0
libtpu: 0.0.40
codegen_flags: <defaults>
</compile_context>

<pallas_src>
import functools

import jax
import jax.numpy as jnp
from jax.experimental import pallas as pl
from jax.experimental.pallas import tpu as pltpu

LANE = 128     # last-dim tiling unit
BF16_SUB = 16  # native bf16 sublane packing: (16, 128) tile


def _round_up(v, m):
    return (v + m - 1) // m * m


def mlp_kernel(x_ref,
               w1_ref, b1_ref,
               w2_ref, b2_ref,
               w3_ref, b3_ref,
               w4_ref, b4_ref,
               o_ref):
    # Four fused linear layers. Matmuls hit the MXU with bf16 operands and f32
    # accumulation; bias adds stay f32; single cast at the store.
    x = x_ref[...].astype(w1_ref.dtype)          # f32 -> bf16 inside the kernel
    h = jnp.dot(x, w1_ref[...],
                preferred_element_type=jnp.float32) + b1_ref[...]
    h = jnp.dot(h.astype(w2_ref.dtype), w2_ref[...],
                preferred_element_type=jnp.float32) + b2_ref[...]
    h = jnp.dot(h.astype(w3_ref.dtype), w3_ref[...],
                preferred_element_type=jnp.float32) + b3_ref[...]
    out = jnp.dot(h.astype(w4_ref.dtype), w4_ref[...],
                  preferred_element_type=jnp.float32) + b4_ref[...]
    o_ref[...] = out.astype(o_ref.dtype)


def init_linear(key, in_features, out_features):
    """PyTorch nn.Linear default init: U(-1/sqrt(in), 1/sqrt(in)), (out, in) layout."""
    kw, kb = jax.random.split(key)
    bound = 1.0 / (in_features ** 0.5)
    w = jax.random.uniform(kw, (out_features, in_features), jnp.float32, -bound, bound)
    b = jax.random.uniform(kb, (out_features,), jnp.float32, -bound, bound)
    return w, b


def prepare_params(params, *, compute_dtype=jnp.bfloat16):
    """One-time preprocessing (NOT per forward call).

    Transposes PyTorch (out, in) weights to (in, out), zero-pads every feature
    dim up to a multiple of 128, casts weights to `compute_dtype`, keeps biases
    in f32 shaped (1, out_padded). Zero padding is exact: padded K-rows/N-cols
    contribute nothing and are sliced off after the kernel.
    """
    prepped = []
    for w, b in params:
        out_f, in_f = w.shape
        in_p = _round_up(in_f, LANE)
        out_p = _round_up(out_f, LANE)
        wt = jnp.zeros((in_p, out_p), compute_dtype).at[:in_f, :out_f].set(
            w.T.astype(compute_dtype))
        bp = jnp.zeros((1, out_p), jnp.float32).at[:, :out_f].set(
            b.astype(jnp.float32))
        prepped.append((wt, bp))
    return prepped


def _choose_batch_tile(B):
    """Large tiles amortize per-grid-step overhead; keep >=2 steps for v7x TCs."""
    if B < 128:
        return _round_up(max(B, 1), BF16_SUB)      # bf16 packs 2 rows/sublane
    Bp128 = _round_up(B, 128)
    half = (Bp128 // 2) // 128 * 128               # at least 2 grid steps when possible
    return min(512, max(128, half))


@functools.partial(jax.jit, static_argnames=("image_size", "num_classes"))
def mlp_forward(x, prepped_params, *, image_size, num_classes):
    """x: (B, 1, image_size, image_size) f32, NCHW like the PyTorch module."""
    B = x.shape[0]
    D = image_size * image_size

    (w1, b1), (w2, b2), (w3, b3), (w4, b4) = prepped_params
    Dp, Hp = w1.shape
    Cp = w4.shape[1]

    # Flatten (same semantics as torch.reshape); keep f32, cast happens in-kernel.
    x2d = jnp.reshape(x, (B, D))

    tm = _choose_batch_tile(B)
    Bp = _round_up(B, tm)
    if Bp != B or Dp != D:                         # pad only when actually needed
        x2d = jnp.pad(x2d, ((0, Bp - B), (0, Dp - D)))

    # Resident (never re-fetched) operands: constant index_map + single buffer.
    resident = lambda shape: pl.BlockSpec(shape, lambda i: (0, 0),
                                          pipeline_mode=pl.Buffered(1))

    # Size the VMEM request to the actual footprint (with generous margin),
    # capped well below v7x's 64 MiB/TC physical capacity.
    weight_bytes = (Dp * Hp + 2 * Hp * Hp + Hp * Cp) * 2 + (3 * Hp + Cp) * 4
    act_bytes = 2 * tm * Dp * 4 + 2 * tm * Cp * 4          # double-buffered in/out
    scratch_bytes = 8 * tm * Hp * 4                        # f32 intermediates headroom
    vmem_limit = int(min(48 * 1024 * 1024,
                         max(16 * 1024 * 1024,
                             2 * (weight_bytes + act_bytes + scratch_bytes))))

    out_padded = pl.pallas_call(
        mlp_kernel,
        out_shape=jax.ShapeDtypeStruct((Bp, Cp), jnp.float32),
        grid=(Bp // tm,),
        in_specs=[
            pl.BlockSpec((tm, Dp), lambda i: (i, 0)),   # activation tile (pipelined)
            resident((Dp, Hp)), resident((1, Hp)),      # weights/biases VMEM-resident
            resident((Hp, Hp)), resident((1, Hp)),
            resident((Hp, Hp)), resident((1, Hp)),
            resident((Hp, Cp)), resident((1, Cp)),
        ],
        out_specs=pl.BlockSpec((tm, Cp), lambda i: (i, 0)),
        compiler_params=pltpu.CompilerParams(
            dimension_semantics=("parallel",),          # 2-TC sharding on v7x
            vmem_limit_bytes=vmem_limit,
        ),
    )(x2d, w1, b1, w2, b2, w3, b3, w4, b4)

    return out_padded[:B, :num_classes]


if __name__ == "__main__":
    # Small shapes consistent with the module (image^2 -> hidden x3 -> classes).
    batch_size = 16
    image_size = 16
    hidden_size = 128
    num_classes = 10

    key = jax.random.PRNGKey(0)
    kx, k1, k2, k3, k4 = jax.random.split(key, 5)

    x = jax.random.normal(kx, (batch_size, 1, image_size, image_size), jnp.float32)

    params = [
        init_linear(k1, image_size * image_size, hidden_size),
        init_linear(k2, hidden_size, hidden_size),
        init_linear(k3, hidden_size, hidden_size),
        init_linear(k4, hidden_size, num_classes),
    ]
    prepped = prepare_params(params)   # one-time: transpose + pad + bf16 cast

    out = mlp_forward(x, prepped, image_size=image_size, num_classes=num_classes)
    out = jax.block_until_ready(out)

    # Pure-JAX reference using the same bf16-operand / f32-accumulation recipe.
    h = x.reshape(-1, image_size * image_size)
    for (w, b) in params:
        h = jnp.dot(h.astype(jnp.bfloat16), w.T.astype(jnp.bfloat16),
                    preferred_element_type=jnp.float32) + b

    assert out.shape == (batch_size, num_classes)
    assert jnp.allclose(out, h, atol=2e-2, rtol=2e-2), float(jnp.abs(out - h).max())

    print("KERNEL_OK")
</pallas_src>

<mosaic_0001>
module attributes {stable_mosaic.version = 11 : i64} {
  func.func @mlp_kernel(%arg0: i32, %arg1: memref<16x256xf32, #tpu.memory_space<vmem>>, %arg2: memref<256x128xbf16, #tpu.memory_space<vmem>>, %arg3: memref<1x128xf32, #tpu.memory_space<vmem>>, %arg4: memref<128x128xbf16, #tpu.memory_space<vmem>>, %arg5: memref<1x128xf32, #tpu.memory_space<vmem>>, %arg6: memref<128x128xbf16, #tpu.memory_space<vmem>>, %arg7: memref<1x128xf32, #tpu.memory_space<vmem>>, %arg8: memref<128x128xbf16, #tpu.memory_space<vmem>>, %arg9: memref<1x128xf32, #tpu.memory_space<vmem>>, %arg10: memref<16x128xf32, #tpu.memory_space<vmem>>) attributes {dimension_semantics = [#tpu.dimension_semantics<parallel>], iteration_bounds = array<i64: 1>, scalar_prefetch = 0 : i64, scratch_operands = 0 : i64, tpu.core_type = #tpu.core_type<tc>, window_params = [{transform_indices = @transform_0, window_bounds = array<i64: 16, 256>}, {pipeline_mode = #tpu.pipeline_mode<synchronous>, transform_indices = @transform_1, window_bounds = array<i64: 256, 128>}, {pipeline_mode = #tpu.pipeline_mode<synchronous>, transform_indices = @transform_2, window_bounds = array<i64: 1, 128>}, {pipeline_mode = #tpu.pipeline_mode<synchronous>, transform_indices = @transform_3, window_bounds = array<i64: 128, 128>}, {pipeline_mode = #tpu.pipeline_mode<synchronous>, transform_indices = @transform_4, window_bounds = array<i64: 1, 128>}, {pipeline_mode = #tpu.pipeline_mode<synchronous>, transform_indices = @transform_5, window_bounds = array<i64: 128, 128>}, {pipeline_mode = #tpu.pipeline_mode<synchronous>, transform_indices = @transform_6, window_bounds = array<i64: 1, 128>}, {pipeline_mode = #tpu.pipeline_mode<synchronous>, transform_indices = @transform_7, window_bounds = array<i64: 128, 128>}, {pipeline_mode = #tpu.pipeline_mode<synchronous>, transform_indices = @transform_8, window_bounds = array<i64: 1, 128>}, {transform_indices = @transform_9, window_bounds = array<i64: 16, 128>}]} {
    %c0 = arith.constant 0 : index
    %c0_0 = arith.constant 0 : index
    %0 = vector.load %arg1[%c0, %c0_0] : memref<16x256xf32, #tpu.memory_space<vmem>>, vector<16x256xf32>
    %1 = arith.truncf %0 : vector<16x256xf32> to vector<16x256xbf16>
    %c0_1 = arith.constant 0 : index
    %c0_2 = arith.constant 0 : index
    %2 = vector.load %arg2[%c0_1, %c0_2] : memref<256x128xbf16, #tpu.memory_space<vmem>>, vector<256x128xbf16>
    %cst = arith.constant dense<0.000000e+00> : vector<16x128xf32>
    %3 = tpu.matmul %1, %2, %cst {dimension_numbers = #tpu.dot_dimension_numbers<[1], [0], [0], [1], [0, 0, 1, 1], [], []>} : vector<16x256xbf16>, vector<256x128xbf16>, vector<16x128xf32> -> vector<16x128xf32>
    %c0_3 = arith.constant 0 : index
    %c0_4 = arith.constant 0 : index
    %4 = vector.load %arg3[%c0_3, %c0_4] : memref<1x128xf32, #tpu.memory_space<vmem>>, vector<1x128xf32>
    %5 = vector.broadcast %4 : vector<1x128xf32> to vector<16x128xf32>
    %6 = arith.addf %3, %5 : vector<16x128xf32>
    %7 = arith.truncf %6 : vector<16x128xf32> to vector<16x128xbf16>
    %c0_5 = arith.constant 0 : index
    %c0_6 = arith.constant 0 : index
    %8 = vector.load %arg4[%c0_5, %c0_6] : memref<128x128xbf16, #tpu.memory_space<vmem>>, vector<128x128xbf16>
    %cst_7 = arith.constant dense<0.000000e+00> : vector<16x128xf32>
    %9 = tpu.matmul %7, %8, %cst_7 {dimension_numbers = #tpu.dot_dimension_numbers<[1], [0], [0], [1], [0, 0, 1, 1], [], []>} : vector<16x128xbf16>, vector<128x128xbf16>, vector<16x128xf32> -> vector<16x128xf32>
    %c0_8 = arith.constant 0 : index
    %c0_9 = arith.constant 0 : index
    %10 = vector.load %arg5[%c0_8, %c0_9] : memref<1x128xf32, #tpu.memory_space<vmem>>, vector<1x128xf32>
    %11 = vector.broadcast %10 : vector<1x128xf32> to vector<16x128xf32>
    %12 = arith.addf %9, %11 : vector<16x128xf32>
    %13 = arith.truncf %12 : vector<16x128xf32> to vector<16x128xbf16>
    %c0_10 = arith.constant 0 : index
    %c0_11 = arith.constant 0 : index
    %14 = vector.load %arg6[%c0_10, %c0_11] : memref<128x128xbf16, #tpu.memory_space<vmem>>, vector<128x128xbf16>
    %cst_12 = arith.constant dense<0.000000e+00> : vector<16x128xf32>
    %15 = tpu.matmul %13, %14, %cst_12 {dimension_numbers = #tpu.dot_dimension_numbers<[1], [0], [0], [1], [0, 0, 1, 1], [], []>} : vector<16x128xbf16>, vector<128x128xbf16>, vector<16x128xf32> -> vector<16x128xf32>
    %c0_13 = arith.constant 0 : index
    %c0_14 = arith.constant 0 : index
    %16 = vector.load %arg7[%c0_13, %c0_14] : memref<1x128xf32, #tpu.memory_space<vmem>>, vector<1x128xf32>
    %17 = vector.broadcast %16 : vector<1x128xf32> to vector<16x128xf32>
    %18 = arith.addf %15, %17 : vector<16x128xf32>
    %19 = arith.truncf %18 : vector<16x128xf32> to vector<16x128xbf16>
    %c0_15 = arith.constant 0 : index
    %c0_16 = arith.constant 0 : index
    %20 = vector.load %arg8[%c0_15, %c0_16] : memref<128x128xbf16, #tpu.memory_space<vmem>>, vector<128x128xbf16>
    %cst_17 = arith.constant dense<0.000000e+00> : vector<16x128xf32>
    %21 = tpu.matmul %19, %20, %cst_17 {dimension_numbers = #tpu.dot_dimension_numbers<[1], [0], [0], [1], [0, 0, 1, 1], [], []>} : vector<16x128xbf16>, vector<128x128xbf16>, vector<16x128xf32> -> vector<16x128xf32>
    %c0_18 = arith.constant 0 : index
    %c0_19 = arith.constant 0 : index
    %22 = vector.load %arg9[%c0_18, %c0_19] : memref<1x128xf32, #tpu.memory_space<vmem>>, vector<1x128xf32>
    %23 = vector.broadcast %22 : vector<1x128xf32> to vector<16x128xf32>
    %24 = arith.addf %21, %23 : vector<16x128xf32>
    %c0_20 = arith.constant 0 : index
    %c0_21 = arith.constant 0 : index
    %25 = vector.load %arg10[%c0_20, %c0_21] : memref<16x128xf32, #tpu.memory_space<vmem>>, vector<16x128xf32>
    tpu.vector_store %arg10[%c0_20, %c0_21], %24 {strides = array<i32>} : memref<16x128xf32, #tpu.memory_space<vmem>>, vector<16x128xf32>,
    return
  }
  func.func @transform_0(%arg0: i32) -> (i32, i32) {
    %c0_i32 = arith.constant 0 : i32
    %c0_i32_0 = arith.constant 0 : i32
    return %arg0, %c0_i32 : i32, i32
  }
  func.func @transform_1(%arg0: i32) -> (i32, i32) {
    %c0_i32 = arith.constant 0 : i32
    %c0_i32_0 = arith.constant 0 : i32
    %c0_i32_1 = arith.constant 0 : i32
    return %c0_i32, %c0_i32_0 : i32, i32
  }
  func.func @transform_2(%arg0: i32) -> (i32, i32) {
    %c0_i32 = arith.constant 0 : i32
    %c0_i32_0 = arith.constant 0 : i32
    %c0_i32_1 = arith.constant 0 : i32
    return %c0_i32, %c0_i32_0 : i32, i32
  }
  func.func @transform_3(%arg0: i32) -> (i32, i32) {
    %c0_i32 = arith.constant 0 : i32
    %c0_i32_0 = arith.constant 0 : i32
    %c0_i32_1 = arith.constant 0 : i32
    return %c0_i32, %c0_i32_0 : i32, i32
  }
  func.func @transform_4(%arg0: i32) -> (i32, i32) {
    %c0_i32 = arith.constant 0 : i32
    %c0_i32_0 = arith.constant 0 : i32
    %c0_i32_1 = arith.constant 0 : i32
    return %c0_i32, %c0_i32_0 : i32, i32
  }
  func.func @transform_5(%arg0: i32) -> (i32, i32) {
    %c0_i32 = arith.constant 0 : i32
    %c0_i32_0 = arith.constant 0 : i32
    %c0_i32_1 = arith.constant 0 : i32
    return %c0_i32, %c0_i32_0 : i32, i32
  }
  func.func @transform_6(%arg0: i32) -> (i32, i32) {
    %c0_i32 = arith.constant 0 : i32
    %c0_i32_0 = arith.constant 0 : i32
    %c0_i32_1 = arith.constant 0 : i32
    return %c0_i32, %c0_i32_0 : i32, i32
  }
  func.func @transform_7(%arg0: i32) -> (i32, i32) {
    %c0_i32 = arith.constant 0 : i32
    %c0_i32_0 = arith.constant 0 : i32
    %c0_i32_1 = arith.constant 0 : i32
    return %c0_i32, %c0_i32_0 : i32, i32
  }
  func.func @transform_8(%arg0: i32) -> (i32, i32) {
    %c0_i32 = arith.constant 0 : i32
    %c0_i32_0 = arith.constant 0 : i32
    %c0_i32_1 = arith.constant 0 : i32
    return %c0_i32, %c0_i32_0 : i32, i32
  }
  func.func @transform_9(%arg0: i32) -> (i32, i32) {
    %c0_i32 = arith.constant 0 : i32
    %c0_i32_0 = arith.constant 0 : i32
    return %arg0, %c0_i32 : i32, i32
  }
}

</mosaic_0001>

<bundles_post_ra>
// kernel: mlp_forward.1
= control target key start
LH: loop header
LB: loop body
LE: loop exit
PB: predicated region body
PF: predicated region fallthrough
CT: control target
= control target key end

     0   :  { %14 = vsyncpa [#allocation3], 0  ;;  %s1069_s0 = inlined_call_operand.vmem [shape: f32[16,256], index: 0, kind: input, shape index: {}]   ;;  %s1070_s1 = inlined_call_operand.vmem [shape: bf16[256,128], index: 1, kind: input, shape index: {}]   ;;  %s1071_s2 = inlined_call_operand.vmem [shape: f32[1,128], index: 2, kind: input, shape index: {}]   ;;  %s1072_s3 = inlined_call_operand.vmem [shape: bf16[128,128], index: 3, kind: input, shape index: {}]   ;;  %s1073_s4 = inlined_call_operand.vmem [shape: f32[1,128], index: 4, kind: input, shape index: {}]   ;;  %s1074_s5 = inlined_call_operand.vmem [shape: bf16[128,128], index: 5, kind: input, shape index: {}]   ;;  %s1075_s6 = inlined_call_operand.vmem [shape: f32[1,128], index: 6, kind: input, shape index: {}]   ;;  %s1076_s7 = inlined_call_operand.hbm [shape: bf16[128,128], index: 7, kind: input, shape index: {}]   ;;  %s1077_s8 = inlined_call_operand.vmem [shape: f32[1,128], index: 8, kind: input, shape index: {}]   ;;  %s1078_s9 = inlined_call_operand.hbm [shape: f32[16,128], index: 9, kind: output, shape index: {}]  }
   0x1   :  { %15 = vsyncpa [#allocation4], 0  ;;  %s837_s30 = smov [#allocation2]   ;;  %s789_s13 = scalar_lea.hbm %s1076_s7, 1024 }
   0x2   :  { %s35_s10 = sshll.u32 %s837_s30, 4  ;;  %p790_p0 = scmp.ne.s32.totalorder %s1076_s7, %s789_s13  ;;  %s36_s10 = int_to_ptr.vmem [resolvable:$true] %s35_s10 }
   0x3   :  { %p793_p1 = scmp.lt.u32.totalorder %s789_s13, %s1076_s7 }
   0x5   :  { %p795_p2 = pnand %p793_p1, %p790_p0 }
   0x7   :  { %798 = shalt.err (!%p795_p2)
}
   0x8   :  { %s799_s18 = scalar_lea.vmem %s36_s10, 1024  ;;  %p804_p4 = scmp.lt.s32.totalorder %s36_s10, %s36_s10 }
   0x9   :  { %p800_p3 = scmp.ne.s32.totalorder %s36_s10, %s799_s18  ;;  %p805_p5 = scmp.lt.s32.totalorder %s799_s18, %s799_s18 }
   0xb   :  { %p806_p6 = por %p805_p5, %p804_p4 }
   0xd   :  { %p807_p7 = pnand %p806_p6, %p800_p3 }
   0xf   :  { %810 = shalt.err (!%p807_p7)
}
  0x10   :  { %s838_s19 = smov 64   ;;  %s839_s20 = smov 4  }
  0x11   :  { %41 = dma.hbm_to_vmem [thread:$0]  %s1076_s7, 1024, %s36_s10, [#allocation3], %s838_s19, %s838_s19, %s839_s20  }
  0x12   :  { %833 = dma.done.wait [#allocation3], 1024  }
  0x13   :  { %834 = vsyncadd [#allocation3], 4294966272  ;;  %v840_v0 = vmov 0.0   ;;  %v749_v1 = vld [vmem:[%s1070_s1 + $0x40] sm:$0xff]   ;;  %v751_v3 = vld [vmem:[%s1070_s1 + $0x48] sm:$0xff]   ;;  %vm841_vm0 = vmmov 0  }
  0x14   :  { %681 = vmatprep.subr.bf16.mxu1 %v840_v0  ;;  %v750_v2 = vld [vmem:[%s1070_s1] sm:$0xff]   ;;  %632 = vmatprep.subr.bf16.mxu0 %v749_v1  ;;  %v752_v4 = vld [vmem:[%s1070_s1 + $0x8] sm:$0xff]   ;;  %v753_v5 = vld [vmem:[%s1070_s1 + $0x50] sm:$0xff]   ;;  %s842_s7 = smov [#allocation5]  }
  0x15   :  { %633 = vmatpush3.bf16.msra.mxu0 %v750_v2  ;;  %v754_v6 = vld [vmem:[%s1070_s1 + $0x10] sm:$0xff]   ;;  %v755_v7 = vld [vmem:[%s1070_s1 + $0x58] sm:$0xff]   ;;  %v757_v9 = vld [vmem:[%s1070_s1 + $0x60] sm:$0xff]   ;;  %697 = vmatprep.mubr.msk.bf16.mxu1 %vm841_vm0, %v840_v0  ;;  %s576_s29 = sshll.u32 %s842_s7, 4  ;;  %s577_s29 = int_to_ptr.vmem [resolvable:$true] %s576_s29 }
  0x16   :  { %634 = vmatprep.subr.bf16.mxu0 %v751_v3  ;;  %v756_v8 = vld [vmem:[%s1070_s1 + $0x18] sm:$0xff]   ;;  %v758_v10 = vld [vmem:[%s1070_s1 + $0x20] sm:$0xff]   ;;  %v759_v11 = vld [vmem:[%s1070_s1 + $0x68] sm:$0xff]   ;;  %p816_p9 = scmp.lt.s32.totalorder %s577_s29, %s577_s29 }
  0x17   :  { %v49_v12 = vld [vmem:[%s1069_s0 + $0x8] sm:$0xff]  ;;  %v51_v13 = vld [vmem:[%s1069_s0 + $0x18] sm:$0xff]  ;;  %v765_v16 = vld [vmem:[%s1072_s3] sm:$0xff]  }
  0x18   :  { %v760_v14 = vld [vmem:[%s1070_s1 + $0x28] sm:$0xff]   ;;  %v53_v15 = vpack.c.bf16 %v51_v13, %v49_v12  ;;  %v761_v17 = vld [vmem:[%s1070_s1 + $0x70] sm:$0xff]   ;;  %682 = vmatpush3.bf16.msra.mxu1 %v765_v16  ;;  %v763_v20 = vld [vmem:[%s1070_s1 + $0x78] sm:$0xff]  }
  0x19   :  { %635 = vmatpush3.bf16.msra.mxu0 %v752_v4  ;;  %v766_v18 = vld [vmem:[%s1072_s3 + $0x8] sm:$0xff]   ;;  %v762_v19 = vld [vmem:[%s1070_s1 + $0x30] sm:$0xff]   ;;  %683 = vmatprep.subr.bf16.mxu1 %v840_v0  ;;  %v764_v22 = vld [vmem:[%s1070_s1 + $0x38] sm:$0xff]  }
  0x1a   :  { %636 = vmatprep.subr.bf16.mxu0 %v753_v5  ;;  %221 = vmatprep.mubr.bf16.mxu0 %v53_v15  ;;  %v767_v21 = vld [vmem:[%s1072_s3 + $0x10] sm:$0xff]   ;;  %v48_v23 = vld [vmem:[%s1069_s0] sm:$0xff]  ;;  %v768_v25 = vld [vmem:[%s1072_s3 + $0x18] sm:$0xff]  }
  0x1b   :  { %v50_v24 = vld [vmem:[%s1069_s0 + $0x10] sm:$0xff]  ;;  %v769_v27 = vld [vmem:[%s1072_s3 + $0x20] sm:$0xff]   ;;  %v770_v28 = vld [vmem:[%s1072_s3 + $0x28] sm:$0xff]  }
  0x1c   :  { %684 = vmatpush3.bf16.msra.mxu1 %v766_v18  ;;  %v52_v26 = vpack.c.bf16 %v50_v24, %v48_v23  ;;  %v771_v29 = vld [vmem:[%s1072_s3 + $0x30] sm:$0xff]   ;;  %v772_v30 = vld [vmem:[%s1072_s3 + $0x38] sm:$0xff]   ;;  %v773_v31 = vld [vmem:[%s1074_s5] sm:$0xff]  }
  0x1d   :  { %637 = vmatpush3.bf16.msra.mxu0 %v754_v6  ;;  %685 = vmatprep.subr.bf16.mxu1 %v840_v0  ;;  %v774_v32 = vld [vmem:[%s1074_s5 + $0x8] sm:$0xff]   ;;  %v775_v33 = vld [vmem:[%s1074_s5 + $0x10] sm:$0xff]   ;;  %v776_v34 = vld [vmem:[%s1074_s5 + $0x18] sm:$0xff]  }
  0x1e   :  { %638 = vmatprep.subr.bf16.mxu0 %v755_v7  ;;  %v777_v35 = vld [vmem:[%s1074_s5 + $0x20] sm:$0xff]   ;;  %v778_v36 = vld [vmem:[%s1074_s5 + $0x28] sm:$0xff]   ;;  %v779_v47 = vld [vmem:[%s1074_s5 + $0x30] sm:$0xff]  }
  0x1f   :  { %v588_v41 = vld [vmem:[%s1071_s2] ss:$0 sm:$0xff]  ;;  %v780_v48 = vld [vmem:[%s1074_s5 + $0x38] sm:$0xff]   ;;  %v782_v50 = vld [vmem:[#allocation2 + $0x8] sm:$0xff]  }
  0x20   :  { %686 = vmatpush3.bf16.msra.mxu1 %v767_v21  ;;  %v781_v49 = vld [vmem:[#allocation2] sm:$0xff]   ;;  %v783_v51 = vld [vmem:[#allocation2 + $0x10] sm:$0xff]   ;;  %v784_v52 = vld [vmem:[#allocation2 + $0x18] sm:$0xff]  }
  0x21   :  { %639 = vmatpush3.bf16.msra.mxu0 %v756_v8  ;;  %687 = vmatprep.subr.bf16.mxu1 %v840_v0  ;;  %v785_v53 = vld [vmem:[#allocation2 + $0x20] sm:$0xff]   ;;  %v786_v54 = vld [vmem:[#allocation2 + $0x28] sm:$0xff]   ;;  %v787_v63 = vld [vmem:[#allocation2 + $0x30] sm:$0xff]  }
  0x22   :  { %640 = vmatprep.subr.bf16.mxu0 %v757_v9  ;;  %v605_v55 = vld [vmem:[%s1073_s4] ss:$0 sm:$0xff]  ;;  %v788_v1 = vld [vmem:[#allocation2 + $0x38] sm:$0xff]  }
  0x23   :  { %v614_v2 = vld [vmem:[%s1075_s6] ss:$0 sm:$0xff]  ;;  %s811_s6 = scalar_lea.vmem %s577_s29, 256 }
  0x24   :  { %688 = vmatpush3.bf16.msra.mxu1 %v768_v25  ;;  %p812_p8 = scmp.ne.s32.totalorder %s577_s29, %s811_s6  ;;  %p817_p10 = scmp.lt.s32.totalorder %s811_s6, %s811_s6 }
  0x25   :  { %641 = vmatpush3.bf16.msra.mxu0 %v758_v10  ;;  %689 = vmatprep.subr.bf16.mxu1 %v840_v0  ;;  %v623_v10 = vld [vmem:[%s1077_s8] ss:$0 sm:$0xff] }
  0x26   :  { %642 = vmatprep.subr.bf16.mxu0 %v759_v11  ;;  %p818_p11 = por %p817_p10, %p816_p9 }
  0x28   :  { %690 = vmatpush3.bf16.msra.mxu1 %v769_v27  ;;  %p819_p12 = pnand %p818_p11, %p812_p8 }
  0x29   :  { %643 = vmatpush3.bf16.msra.mxu0 %v760_v14  ;;  %691 = vmatprep.subr.bf16.mxu1 %v840_v0 }
  0x2a   :  { %644 = vmatprep.subr.bf16.mxu0 %v761_v17 }
  0x2c   :  { %692 = vmatpush3.bf16.msra.mxu1 %v770_v28 }
  0x2d   :  { %645 = vmatpush3.bf16.msra.mxu0 %v762_v19  ;;  %693 = vmatprep.subr.bf16.mxu1 %v840_v0 }
  0x2e   :  { %646 = vmatprep.subr.bf16.mxu0 %v763_v20 }
  0x30   :  { %694 = vmatpush3.bf16.msra.mxu1 %v771_v29 }
  0x31   :  { %647 = vmatpush3.bf16.msra.mxu0 %v764_v22  ;;  %695 = vmatprep.subr.bf16.mxu1 %v840_v0 }
  0x32   :  { %701 = vmatprep.subr.bf16.mxu0 %v840_v0 }
  0x34   :  { %222 = vmatmul.mubr.bf16.vlgmr.msra.gmra.mrb[0].mxu0 %v52_v26  ;;  %696 = vmatpush3.bf16.msra.mxu1 %v772_v30 }
  0x35   :  { %717 = vmatprep.mubr.msk.bf16.mxu0 %vm841_vm0, %v840_v0  ;;  %721 = vmatprep.subr.bf16.mxu1 %v840_v0 }
  0x36   :  { %702 = vmatpush3.bf16.msra.mxu0 %v773_v31 }
  0x37   :  { %703 = vmatprep.subr.bf16.mxu0 %v840_v0 }
  0x3a   :  { %704 = vmatpush3.bf16.msra.mxu0 %v774_v32 }
  0x3b   :  { %705 = vmatprep.subr.bf16.mxu0 %v840_v0 }
  0x3e   :  { %706 = vmatpush3.bf16.msra.mxu0 %v775_v33 }
  0x3f   :  { %707 = vmatprep.subr.bf16.mxu0 %v840_v0 }
  0x42   :  { %708 = vmatpush3.bf16.msra.mxu0 %v776_v34 }
  0x43   :  { %709 = vmatprep.subr.bf16.mxu0 %v840_v0 }
  0x46   :  { %710 = vmatpush3.bf16.msra.mxu0 %v777_v35 }
  0x47   :  { %711 = vmatprep.subr.bf16.mxu0 %v840_v0 }
  0x4a   :  { %712 = vmatpush3.bf16.msra.mxu0 %v778_v36 }
  0x4b   :  { %713 = vmatprep.subr.bf16.mxu0 %v840_v0 }
  0x4e   :  { %714 = vmatpush3.bf16.msra.mxu0 %v779_v47 }
  0x4f   :  { %715 = vmatprep.subr.bf16.mxu0 %v840_v0 }
  0x52   :  { %716 = vmatpush3.bf16.msra.mxu0 %v780_v48 }
 0x107   :  { %v648_v37 = vpop.f32.mrb[0].mxu0 }
 0x108   :  { %v649_v38 = vpop.f32.mrb[1].mxu0 }
 0x109   :  { %v650_v39 = vadd.f32 %v649_v38, %v648_v37  ;;  %v651_v40 = vpop.f32.mrb[2].mxu0 }
 0x10a   :  { %v652_v42 = vpop.f32.mrb[3].mxu0 }
 0x10b   :  { %v653_v43 = vadd.f32 %v652_v42, %v651_v40  ;;  %v224_v44 = vadd.f32 %v650_v39, %v588_v41 }
 0x10d   :  { %v227_v45 = vadd.f32 %v653_v43, %v588_v41 }
 0x10f   :  { %v230_v46 = vpack.c.bf16 %v227_v45, %v224_v44 }
 0x111   :  { %698 = vmatmul.mubr.bf16.vlgmr.msra.gmra.mrb[0].mxu1 %v230_v46 }
 0x112   :  { %737 = vmatprep.mubr.msk.bf16.mxu1 %vm841_vm0, %v840_v0  ;;  %722 = vmatpush3.bf16.msra.mxu1 %v781_v49 }
 0x113   :  { %723 = vmatprep.subr.bf16.mxu1 %v840_v0 }
 0x116   :  { %724 = vmatpush3.bf16.msra.mxu1 %v782_v50 }
 0x117   :  { %725 = vmatprep.subr.bf16.mxu1 %v840_v0 }
 0x11a   :  { %726 = vmatpush3.bf16.msra.mxu1 %v783_v51 }
 0x11b   :  { %727 = vmatprep.subr.bf16.mxu1 %v840_v0 }
 0x11e   :  { %728 = vmatpush3.bf16.msra.mxu1 %v784_v52 }
 0x11f   :  { %729 = vmatprep.subr.bf16.mxu1 %v840_v0 }
 0x122   :  { %730 = vmatpush3.bf16.msra.mxu1 %v785_v53 }
 0x123   :  { %731 = vmatprep.subr.bf16.mxu1 %v840_v0 }
 0x126   :  { %732 = vmatpush3.bf16.msra.mxu1 %v786_v54 }
 0x127   :  { %733 = vmatprep.subr.bf16.mxu1 %v840_v0 }
 0x12a   :  { %734 = vmatpush3.bf16.msra.mxu1 %v787_v63 }
 0x12b   :  { %735 = vmatprep.subr.bf16.mxu1 %v840_v0 }
 0x12e   :  { %736 = vmatpush3.bf16.msra.mxu1 %v788_v1 }
 0x1e4   :  { %v336_v56 = vpop.f32.mrb[0].mxu1 }
 0x1e5   :  { %v699_v57 = vpop.f32.mrb[1].mxu1  ;;  %v337_v59 = vadd.f32 %v605_v55, %v336_v56 }
 0x1e6   :  { %v339_v58 = vpop.f32.mrb[2].mxu1 }
 0x1e7   :  { %v340_v60 = vadd.f32 %v605_v55, %v339_v58  ;;  %v700_v61 = vpop.f32.mrb[3].mxu1 }
 0x1e9   :  { %v343_v62 = vpack.c.bf16 %v340_v60, %v337_v59 }
 0x1eb   :  { %718 = vmatmul.mubr.bf16.vlgmr.msra.gmra.mrb[4].mxu0 %v343_v62 }
 0x2be   :  { %v449_v3 = vpop.f32.mrb[4].mxu0 }
 0x2bf   :  { %v719_v4 = vpop.f32.mrb[5].mxu0  ;;  %v450_v6 = vadd.f32 %v614_v2, %v449_v3 }
 0x2c0   :  { %v452_v5 = vpop.f32.mrb[6].mxu0 }
 0x2c1   :  { %v453_v7 = vadd.f32 %v614_v2, %v452_v5  ;;  %v720_v8 = vpop.f32.mrb[7].mxu0 }
 0x2c3   :  { %v456_v9 = vpack.c.bf16 %v453_v7, %v450_v6 }
 0x2c5   :  { %738 = vmatmul.mubr.bf16.vlgmr.msra.gmra.mrb[4].mxu1 %v456_v9 }
 0x398   :  { %v562_v0 = vpop.f32.mrb[4].mxu1 }
 0x399   :  { %v563_v11 = vadd.f32 %v623_v10, %v562_v0  ;;  %v739_v12 = vpop.f32.mrb[5].mxu1 }
 0x39a   :  { %v565_v13 = vpop.f32.mrb[6].mxu1 }
 0x39b   :  { %569 = vst [vmem:[#allocation5] sm:$0xff] %v563_v11  ;;  %v566_v14 = vadd.f32 %v623_v10, %v565_v13  ;;  %v740_v15 = vpop.f32.mrb[7].mxu1 }
 0x39d   :  { %570 = vst [vmem:[#allocation5 + $0x8] sm:$0xff] %v566_v14 }
 0x39e   :  { %822 = shalt.err (!%p819_p12)
}
 0x39f   :  { %s823_s10 = scalar_lea.hbm %s1078_s9, 256 }
 0x3a0   :  { %p824_p13 = scmp.ne.s32.totalorder %s1078_s9, %s823_s10  ;;  %p827_p0 = scmp.lt.u32.totalorder %s823_s10, %s1078_s9 }
 0x3a2   :  { %p829_p1 = pnand %p827_p0, %p824_p13 }
 0x3a4   :  { %832 = shalt.err (!%p829_p1)
}
 0x3a5   :  { %s843_s3 = smov 128   ;;  %s844_s15 = smov 8  }
 0x3a6   :  { %582 = dma.vmem_to_hbm [thread:$0]  %s577_s29, 256, %s1078_s9, [#allocation4], %s843_s3, %s843_s3, %s844_s15  }
 0x3a7   :  { %835 = dma.done.wait [#allocation4], 256  }
 0x3a8   :  { %836 = vsyncadd [#allocation4], 4294967040 }
 0x3a9   :  { %586 = vsyncpa [#allocation3], 1 }
 0x3aa   :  { %587 = vsyncpa [#allocation4], 1 }

</bundles_post_ra>
